<compile_context>
chip_gen: v7x
topology: tpu7x:2x2x1
jax: 0.10.0
libtpu: 0.0.40
codegen_flags: <defaults>
</compile_context>

<pallas_src>
import math
import functools

import jax
import jax.numpy as jnp
from jax import lax
from jax.experimental import pallas as pl
from jax.experimental.pallas import tpu as pltpu


# ------------------------------ fused MHA kernel ------------------------------
def _fused_mha_kernel(q_ref, k_ref, v_ref, wq_ref, wk_ref, wv_ref, wo_ref,
                      o_ref, att_ref, *, nhead, d_k, n_batch, s_len, t_len):
    """Single program. q_ref: (N*S, E), k_ref/v_ref: (N*T, E) -- batch folded into
    the sublane/M axis. att_ref: VMEM (N*S, E) scratch holding concatenated heads."""
    # x @ W.T (nn.Linear, bias=False): contract the last dims of both operands so
    # weights stay in PyTorch (out, in) layout -- no transpose materialized.
    dn = (((1,), (1,)), ((), ()))
    scale = 1.0 / math.sqrt(d_k)

    # Q/K/V projections with batch folded into M (better sublane fill, 3 MXU pushes
    # total instead of 3 per batch element).
    q = lax.dot_general(q_ref[...], wq_ref[...], dn,
                        preferred_element_type=jnp.float32) * scale  # scale folded into q
    k = lax.dot_general(k_ref[...], wk_ref[...], dn, preferred_element_type=jnp.float32)
    v = lax.dot_general(v_ref[...], wv_ref[...], dn, preferred_element_type=jnp.float32)

    # Per-(batch, head) scaled dot-product attention.  n_batch / nhead are static and
    # tiny -> Python-unrolled loops with static sublane/lane slices (no reshapes).
    for n in range(n_batch):
        rq = slice(n * s_len, (n + 1) * s_len)   # query rows for this batch
        rk = slice(n * t_len, (n + 1) * t_len)   # key/value rows for this batch
        for h in range(nhead):
            c = slice(h * d_k, (h + 1) * d_k)    # lane slice for this head
            qh, kh, vh = q[rq, c], k[rk, c], v[rk, c]
            # q_h @ k_h.T without materializing k_h.T (contract d_k with d_k).
            s = lax.dot_general(qh, kh, dn, preferred_element_type=jnp.float32)  # (S, T)
            m = jnp.max(s, axis=-1, keepdims=True)
            e = jnp.exp(s - m)
            p = e * pl.reciprocal(jnp.sum(e, axis=-1, keepdims=True), approx=False)
            # Write this head's (S, d_k) result straight into its lane slice of the
            # VMEM scratch -- no lane-concatenate of 8-wide pieces.
            att_ref[rq, c] = jnp.dot(p, vh, preferred_element_type=jnp.float32)

    # Output projection: one (N*S, E) x (E, E) matmul; single full-block store.
    out = lax.dot_general(att_ref[...], wo_ref[...], dn, preferred_element_type=jnp.float32)
    o_ref[...] = out.astype(o_ref.dtype)


# ------------------------------- module wrapper --------------------------------
def multihead_attention(query, key, value, params, nhead):
    """Pallas implementation of MultiheadAttention.forward (mask=None, dropout=None).

    query: (S, N, E), key/value: (T, N, E) float32.  Returns (S, N, E).
    """
    S, N, E = query.shape
    T = key.shape[0]
    assert E % nhead == 0
    d_k = E // nhead

    # One layout fix in the wrapper: (S, N, E) -> (N, S, E) -> (N*S, E) so the kernel
    # sees (8,128)-friendly 2-D slabs with batch on the sublane axis (not padded).
    q2d = jnp.transpose(query, (1, 0, 2)).reshape(N * S, E)
    k2d = jnp.transpose(key, (1, 0, 2)).reshape(N * T, E)
    v2d = jnp.transpose(value, (1, 0, 2)).reshape(N * T, E)

    kernel = functools.partial(_fused_mha_kernel, nhead=nhead, d_k=d_k,
                               n_batch=N, s_len=S, t_len=T)

    vmem_spec = pl.BlockSpec(memory_space=pltpu.MemorySpace.VMEM)
    out2d = pl.pallas_call(
        kernel,
        out_shape=jax.ShapeDtypeStruct((N * S, E), query.dtype),
        # Single program, whole (tiny) arrays resident in VMEM -- no grid-step
        # overhead on 1-TC chips, no per-step DMA of already-resident weights.
        in_specs=[vmem_spec] * 7,
        out_specs=vmem_spec,
        scratch_shapes=[pltpu.VMEM((N * S, E), jnp.float32)],
    )(q2d, k2d, v2d, params["wq"], params["wk"], params["wv"], params["wo"])

    # (N*S, E) -> (S, N, E): one cheap layout op on the small final output only.
    return jnp.transpose(out2d.reshape(N, S, E), (1, 0, 2))


# ------------------------------ pure-JAX reference ------------------------------
def _reference(query, key, value, params, nhead):
    wq, wk, wv, wo = params["wq"], params["wk"], params["wv"], params["wo"]
    S, N, E = query.shape
    T = key.shape[0]
    d_k = E // nhead
    q = (query @ wq.T).reshape(S, N, nhead, d_k).transpose(1, 2, 0, 3)
    k = (key @ wk.T).reshape(T, N, nhead, d_k).transpose(1, 2, 0, 3)
    v = (value @ wv.T).reshape(T, N, nhead, d_k).transpose(1, 2, 0, 3)
    scores = jnp.einsum("nhsd,nhtd->nhst", q, k) / math.sqrt(d_k)
    w = jax.nn.softmax(scores, axis=-1)
    att = jnp.einsum("nhst,nhtd->nhsd", w, v)
    att = att.transpose(2, 0, 1, 3).reshape(S, N, E)
    return att @ wo.T


if __name__ == "__main__":
    # Small shapes consistent with the module: seq=8, batch=2, d_model=32, nhead=4
    L, N, E, H = 8, 2, 32, 4
    key_rng = jax.random.PRNGKey(0)
    k1, k2, k3, k4, k5, k6, k7 = jax.random.split(key_rng, 7)

    bound = 1.0 / math.sqrt(E)  # nn.Linear default uniform init range
    params = {
        "wq": jax.random.uniform(k1, (E, E), jnp.float32, -bound, bound),
        "wk": jax.random.uniform(k2, (E, E), jnp.float32, -bound, bound),
        "wv": jax.random.uniform(k3, (E, E), jnp.float32, -bound, bound),
        "wo": jax.random.uniform(k4, (E, E), jnp.float32, -bound, bound),
    }

    query = jax.random.normal(k5, (L, N, E), jnp.float32)
    key = jax.random.normal(k6, (L, N, E), jnp.float32)
    value = jax.random.normal(k7, (L, N, E), jnp.float32)

    out = multihead_attention(query, key, value, params, H)
    out = jax.block_until_ready(out)

    ref = _reference(query, key, value, params, H)
    assert out.shape == (L, N, E)
    # Tolerance covers MXU-vs-XLA f32 matmul pass differences only (exact softmax
    # reciprocal now); observed error is << 1e-3.
    assert jnp.allclose(out, ref, atol=2e-3, rtol=2e-3), "mismatch vs reference"

    print("KERNEL_OK")
</pallas_src>

<mosaic_0001>
module attributes {stable_mosaic.version = 11 : i64} {
  func.func @_fused_mha_kernel(%arg0: memref<16x32xf32, #tpu.memory_space<vmem>>, %arg1: memref<16x32xf32, #tpu.memory_space<vmem>>, %arg2: memref<16x32xf32, #tpu.memory_space<vmem>>, %arg3: memref<32x32xf32, #tpu.memory_space<vmem>>, %arg4: memref<32x32xf32, #tpu.memory_space<vmem>>, %arg5: memref<32x32xf32, #tpu.memory_space<vmem>>, %arg6: memref<32x32xf32, #tpu.memory_space<vmem>>, %arg7: memref<16x32xf32, #tpu.memory_space<vmem>>, %arg8: memref<16x32xf32, #tpu.memory_space<vmem>>) attributes {dimension_semantics = [], scalar_prefetch = 0 : i64, scratch_operands = 1 : i64, tpu.core_type = #tpu.core_type<tc>} {
    %c0 = arith.constant 0 : index
    %c0_0 = arith.constant 0 : index
    %0 = vector.load %arg0[%c0, %c0_0] : memref<16x32xf32, #tpu.memory_space<vmem>>, vector<16x32xf32>
    %c0_1 = arith.constant 0 : index
    %c0_2 = arith.constant 0 : index
    %1 = vector.load %arg3[%c0_1, %c0_2] : memref<32x32xf32, #tpu.memory_space<vmem>>, vector<32x32xf32>
    %cst = arith.constant dense<0.000000e+00> : vector<16x32xf32>
    %2 = tpu.matmul %0, %1, %cst {dimension_numbers = #tpu.dot_dimension_numbers<[1], [1], [0], [0], [0, 0, 1, 0], [], []>} : vector<16x32xf32>, vector<32x32xf32>, vector<16x32xf32> -> vector<16x32xf32>
    %cst_3 = arith.constant 0.353553385 : f32
    %3 = vector.broadcast %cst_3 : f32 to vector<16x32xf32>
    %4 = arith.mulf %2, %3 : vector<16x32xf32>
    %c0_4 = arith.constant 0 : index
    %c0_5 = arith.constant 0 : index
    %5 = vector.load %arg1[%c0_4, %c0_5] : memref<16x32xf32, #tpu.memory_space<vmem>>, vector<16x32xf32>
    %c0_6 = arith.constant 0 : index
    %c0_7 = arith.constant 0 : index
    %6 = vector.load %arg4[%c0_6, %c0_7] : memref<32x32xf32, #tpu.memory_space<vmem>>, vector<32x32xf32>
    %cst_8 = arith.constant dense<0.000000e+00> : vector<16x32xf32>
    %7 = tpu.matmul %5, %6, %cst_8 {dimension_numbers = #tpu.dot_dimension_numbers<[1], [1], [0], [0], [0, 0, 1, 0], [], []>} : vector<16x32xf32>, vector<32x32xf32>, vector<16x32xf32> -> vector<16x32xf32>
    %c0_9 = arith.constant 0 : index
    %c0_10 = arith.constant 0 : index
    %8 = vector.load %arg2[%c0_9, %c0_10] : memref<16x32xf32, #tpu.memory_space<vmem>>, vector<16x32xf32>
    %c0_11 = arith.constant 0 : index
    %c0_12 = arith.constant 0 : index
    %9 = vector.load %arg5[%c0_11, %c0_12] : memref<32x32xf32, #tpu.memory_space<vmem>>, vector<32x32xf32>
    %cst_13 = arith.constant dense<0.000000e+00> : vector<16x32xf32>
    %10 = tpu.matmul %8, %9, %cst_13 {dimension_numbers = #tpu.dot_dimension_numbers<[1], [1], [0], [0], [0, 0, 1, 0], [], []>} : vector<16x32xf32>, vector<32x32xf32>, vector<16x32xf32> -> vector<16x32xf32>
    %11 = vector.extract_strided_slice %4 {offsets = [0, 0], sizes = [8, 8], strides = [1, 1]} : vector<16x32xf32> to vector<8x8xf32>
    %12 = vector.extract_strided_slice %7 {offsets = [0, 0], sizes = [8, 8], strides = [1, 1]} : vector<16x32xf32> to vector<8x8xf32>
    %13 = vector.extract_strided_slice %10 {offsets = [0, 0], sizes = [8, 8], strides = [1, 1]} : vector<16x32xf32> to vector<8x8xf32>
    %cst_14 = arith.constant dense<0.000000e+00> : vector<8x8xf32>
    %14 = tpu.matmul %11, %12, %cst_14 {dimension_numbers = #tpu.dot_dimension_numbers<[1], [1], [0], [0], [0, 0, 1, 0], [], []>} : vector<8x8xf32>, vector<8x8xf32>, vector<8x8xf32> -> vector<8x8xf32>
    %cst_15 = arith.constant dense<0xFF800000> : vector<8xf32>
    %15 = vector.multi_reduction <maximumf>, %14, %cst_15 [1] : vector<8x8xf32> to vector<8xf32>
    %16 = vector.shape_cast %15 : vector<8xf32> to vector<8x1xf32>
    %17 = vector.broadcast %16 : vector<8x1xf32> to vector<8x8xf32>
    %18 = arith.subf %14, %17 : vector<8x8xf32>
    %19 = math.exp %18 : vector<8x8xf32>
    %cst_16 = arith.constant dense<0.000000e+00> : vector<8xf32>
    %20 = vector.multi_reduction <add>, %19, %cst_16 [1] : vector<8x8xf32> to vector<8xf32>
    %21 = vector.shape_cast %20 : vector<8xf32> to vector<8x1xf32>
    %22 = tpu.reciprocal %21 : vector<8x1xf32> -> vector<8x1xf32>
    %23 = vector.broadcast %22 : vector<8x1xf32> to vector<8x8xf32>
    %24 = arith.mulf %19, %23 : vector<8x8xf32>
    %cst_17 = arith.constant dense<0.000000e+00> : vector<8x8xf32>
    %25 = tpu.matmul %24, %13, %cst_17 {dimension_numbers = #tpu.dot_dimension_numbers<[1], [0], [0], [1], [0, 0, 1, 1], [], []>} : vector<8x8xf32>, vector<8x8xf32>, vector<8x8xf32> -> vector<8x8xf32>
    %c0_18 = arith.constant 0 : index
    %c0_19 = arith.constant 0 : index
    %26 = vector.load %arg8[%c0_18, %c0_19] : memref<16x32xf32, #tpu.memory_space<vmem>>, vector<8x8xf32>
    tpu.vector_store %arg8[%c0_18, %c0_19], %25 {strides = array<i32>} : memref<16x32xf32, #tpu.memory_space<vmem>>, vector<8x8xf32>,
    %27 = vector.extract_strided_slice %4 {offsets = [0, 8], sizes = [8, 8], strides = [1, 1]} : vector<16x32xf32> to vector<8x8xf32>
    %28 = vector.extract_strided_slice %7 {offsets = [0, 8], sizes = [8, 8], strides = [1, 1]} : vector<16x32xf32> to vector<8x8xf32>
    %29 = vector.extract_strided_slice %10 {offsets = [0, 8], sizes = [8, 8], strides = [1, 1]} : vector<16x32xf32> to vector<8x8xf32>
    %cst_20 = arith.constant dense<0.000000e+00> : vector<8x8xf32>
    %30 = tpu.matmul %27, %28, %cst_20 {dimension_numbers = #tpu.dot_dimension_numbers<[1], [1], [0], [0], [0, 0, 1, 0], [], []>} : vector<8x8xf32>, vector<8x8xf32>, vector<8x8xf32> -> vector<8x8xf32>
    %cst_21 = arith.constant dense<0xFF800000> : vector<8xf32>
    %31 = vector.multi_reduction <maximumf>, %30, %cst_21 [1] : vector<8x8xf32> to vector<8xf32>
    %32 = vector.shape_cast %31 : vector<8xf32> to vector<8x1xf32>
    %33 = vector.broadcast %32 : vector<8x1xf32> to vector<8x8xf32>
    %34 = arith.subf %30, %33 : vector<8x8xf32>
    %35 = math.exp %34 : vector<8x8xf32>
    %cst_22 = arith.constant dense<0.000000e+00> : vector<8xf32>
    %36 = vector.multi_reduction <add>, %35, %cst_22 [1] : vector<8x8xf32> to vector<8xf32>
    %37 = vector.shape_cast %36 : vector<8xf32> to vector<8x1xf32>
    %38 = tpu.reciprocal %37 : vector<8x1xf32> -> vector<8x1xf32>
    %39 = vector.broadcast %38 : vector<8x1xf32> to vector<8x8xf32>
    %40 = arith.mulf %35, %39 : vector<8x8xf32>
    %cst_23 = arith.constant dense<0.000000e+00> : vector<8x8xf32>
    %41 = tpu.matmul %40, %29, %cst_23 {dimension_numbers = #tpu.dot_dimension_numbers<[1], [0], [0], [1], [0, 0, 1, 1], [], []>} : vector<8x8xf32>, vector<8x8xf32>, vector<8x8xf32> -> vector<8x8xf32>
    %c0_24 = arith.constant 0 : index
    %c8 = arith.constant 8 : index
    %42 = vector.load %arg8[%c0_24, %c8] : memref<16x32xf32, #tpu.memory_space<vmem>>, vector<8x8xf32>
    tpu.vector_store %arg8[%c0_24, %c8], %41 {strides = array<i32>} : memref<16x32xf32, #tpu.memory_space<vmem>>, vector<8x8xf32>,
    %43 = vector.extract_strided_slice %4 {offsets = [0, 16], sizes = [8, 8], strides = [1, 1]} : vector<16x32xf32> to vector<8x8xf32>
    %44 = vector.extract_strided_slice %7 {offsets = [0, 16], sizes = [8, 8], strides = [1, 1]} : vector<16x32xf32> to vector<8x8xf32>
    %45 = vector.extract_strided_slice %10 {offsets = [0, 16], sizes = [8, 8], strides = [1, 1]} : vector<16x32xf32> to vector<8x8xf32>
    %cst_25 = arith.constant dense<0.000000e+00> : vector<8x8xf32>
    %46 = tpu.matmul %43, %44, %cst_25 {dimension_numbers = #tpu.dot_dimension_numbers<[1], [1], [0], [0], [0, 0, 1, 0], [], []>} : vector<8x8xf32>, vector<8x8xf32>, vector<8x8xf32> -> vector<8x8xf32>
    %cst_26 = arith.constant dense<0xFF800000> : vector<8xf32>
    %47 = vector.multi_reduction <maximumf>, %46, %cst_26 [1] : vector<8x8xf32> to vector<8xf32>
    %48 = vector.shape_cast %47 : vector<8xf32> to vector<8x1xf32>
    %49 = vector.broadcast %48 : vector<8x1xf32> to vector<8x8xf32>
    %50 = arith.subf %46, %49 : vector<8x8xf32>
    %51 = math.exp %50 : vector<8x8xf32>
    %cst_27 = arith.constant dense<0.000000e+00> : vector<8xf32>
    %52 = vector.multi_reduction <add>, %51, %cst_27 [1] : vector<8x8xf32> to vector<8xf32>
    %53 = vector.shape_cast %52 : vector<8xf32> to vector<8x1xf32>
    %54 = tpu.reciprocal %53 : vector<8x1xf32> -> vector<8x1xf32>
    %55 = vector.broadcast %54 : vector<8x1xf32> to vector<8x8xf32>
    %56 = arith.mulf %51, %55 : vector<8x8xf32>
    %cst_28 = arith.constant dense<0.000000e+00> : vector<8x8xf32>
    %57 = tpu.matmul %56, %45, %cst_28 {dimension_numbers = #tpu.dot_dimension_numbers<[1], [0], [0], [1], [0, 0, 1, 1], [], []>} : vector<8x8xf32>, vector<8x8xf32>, vector<8x8xf32> -> vector<8x8xf32>
    %c0_29 = arith.constant 0 : index
    %c16 = arith.constant 16 : index
    %58 = vector.load %arg8[%c0_29, %c16] : memref<16x32xf32, #tpu.memory_space<vmem>>, vector<8x8xf32>
    tpu.vector_store %arg8[%c0_29, %c16], %57 {strides = array<i32>} : memref<16x32xf32, #tpu.memory_space<vmem>>, vector<8x8xf32>,
    %59 = vector.extract_strided_slice %4 {offsets = [0, 24], sizes = [8, 8], strides = [1, 1]} : vector<16x32xf32> to vector<8x8xf32>
    %60 = vector.extract_strided_slice %7 {offsets = [0, 24], sizes = [8, 8], strides = [1, 1]} : vector<16x32xf32> to vector<8x8xf32>
    %61 = vector.extract_strided_slice %10 {offsets = [0, 24], sizes = [8, 8], strides = [1, 1]} : vector<16x32xf32> to vector<8x8xf32>
    %cst_30 = arith.constant dense<0.000000e+00> : vector<8x8xf32>
    %62 = tpu.matmul %59, %60, %cst_30 {dimension_numbers = #tpu.dot_dimension_numbers<[1], [1], [0], [0], [0, 0, 1, 0], [], []>} : vector<8x8xf32>, vector<8x8xf32>, vector<8x8xf32> -> vector<8x8xf32>
    %cst_31 = arith.constant dense<0xFF800000> : vector<8xf32>
    %63 = vector.multi_reduction <maximumf>, %62, %cst_31 [1] : vector<8x8xf32> to vector<8xf32>
    %64 = vector.shape_cast %63 : vector<8xf32> to vector<8x1xf32>
    %65 = vector.broadcast %64 : vector<8x1xf32> to vector<8x8xf32>
    %66 = arith.subf %62, %65 : vector<8x8xf32>
    %67 = math.exp %66 : vector<8x8xf32>
    %cst_32 = arith.constant dense<0.000000e+00> : vector<8xf32>
    %68 = vector.multi_reduction <add>, %67, %cst_32 [1] : vector<8x8xf32> to vector<8xf32>
    %69 = vector.shape_cast %68 : vector<8xf32> to vector<8x1xf32>
    %70 = tpu.reciprocal %69 : vector<8x1xf32> -> vector<8x1xf32>
    %71 = vector.broadcast %70 : vector<8x1xf32> to vector<8x8xf32>
    %72 = arith.mulf %67, %71 : vector<8x8xf32>
    %cst_33 = arith.constant dense<0.000000e+00> : vector<8x8xf32>
    %73 = tpu.matmul %72, %61, %cst_33 {dimension_numbers = #tpu.dot_dimension_numbers<[1], [0], [0], [1], [0, 0, 1, 1], [], []>} : vector<8x8xf32>, vector<8x8xf32>, vector<8x8xf32> -> vector<8x8xf32>
    %c0_34 = arith.constant 0 : index
    %c24 = arith.constant 24 : index
    %74 = vector.load %arg8[%c0_34, %c24] : memref<16x32xf32, #tpu.memory_space<vmem>>, vector<8x8xf32>
    tpu.vector_store %arg8[%c0_34, %c24], %73 {strides = array<i32>} : memref<16x32xf32, #tpu.memory_space<vmem>>, vector<8x8xf32>,
    %75 = vector.extract_strided_slice %4 {offsets = [8, 0], sizes = [8, 8], strides = [1, 1]} : vector<16x32xf32> to vector<8x8xf32>
    %76 = vector.extract_strided_slice %7 {offsets = [8, 0], sizes = [8, 8], strides = [1, 1]} : vector<16x32xf32> to vector<8x8xf32>
    %77 = vector.extract_strided_slice %10 {offsets = [8, 0], sizes = [8, 8], strides = [1, 1]} : vector<16x32xf32> to vector<8x8xf32>
    %cst_35 = arith.constant dense<0.000000e+00> : vector<8x8xf32>
    %78 = tpu.matmul %75, %76, %cst_35 {dimension_numbers = #tpu.dot_dimension_numbers<[1], [1], [0], [0], [0, 0, 1, 0], [], []>} : vector<8x8xf32>, vector<8x8xf32>, vector<8x8xf32> -> vector<8x8xf32>
    %cst_36 = arith.constant dense<0xFF800000> : vector<8xf32>
    %79 = vector.multi_reduction <maximumf>, %78, %cst_36 [1] : vector<8x8xf32> to vector<8xf32>
    %80 = vector.shape_cast %79 : vector<8xf32> to vector<8x1xf32>
    %81 = vector.broadcast %80 : vector<8x1xf32> to vector<8x8xf32>
    %82 = arith.subf %78, %81 : vector<8x8xf32>
    %83 = math.exp %82 : vector<8x8xf32>
    %cst_37 = arith.constant dense<0.000000e+00> : vector<8xf32>
    %84 = vector.multi_reduction <add>, %83, %cst_37 [1] : vector<8x8xf32> to vector<8xf32>
    %85 = vector.shape_cast %84 : vector<8xf32> to vector<8x1xf32>
    %86 = tpu.reciprocal %85 : vector<8x1xf32> -> vector<8x1xf32>
    %87 = vector.broadcast %86 : vector<8x1xf32> to vector<8x8xf32>
    %88 = arith.mulf %83, %87 : vector<8x8xf32>
    %cst_38 = arith.constant dense<0.000000e+00> : vector<8x8xf32>
    %89 = tpu.matmul %88, %77, %cst_38 {dimension_numbers = #tpu.dot_dimension_numbers<[1], [0], [0], [1], [0, 0, 1, 1], [], []>} : vector<8x8xf32>, vector<8x8xf32>, vector<8x8xf32> -> vector<8x8xf32>
    %c8_39 = arith.constant 8 : index
    %c0_40 = arith.constant 0 : index
    %90 = vector.load %arg8[%c8_39, %c0_40] : memref<16x32xf32, #tpu.memory_space<vmem>>, vector<8x8xf32>
    tpu.vector_store %arg8[%c8_39, %c0_40], %89 {strides = array<i32>} : memref<16x32xf32, #tpu.memory_space<vmem>>, vector<8x8xf32>,
    %91 = vector.extract_strided_slice %4 {offsets = [8, 8], sizes = [8, 8], strides = [1, 1]} : vector<16x32xf32> to vector<8x8xf32>
    %92 = vector.extract_strided_slice %7 {offsets = [8, 8], sizes = [8, 8], strides = [1, 1]} : vector<16x32xf32> to vector<8x8xf32>
    %93 = vector.extract_strided_slice %10 {offsets = [8, 8], sizes = [8, 8], strides = [1, 1]} : vector<16x32xf32> to vector<8x8xf32>
    %cst_41 = arith.constant dense<0.000000e+00> : vector<8x8xf32>
    %94 = tpu.matmul %91, %92, %cst_41 {dimension_numbers = #tpu.dot_dimension_numbers<[1], [1], [0], [0], [0, 0, 1, 0], [], []>} : vector<8x8xf32>, vector<8x8xf32>, vector<8x8xf32> -> vector<8x8xf32>
    %cst_42 = arith.constant dense<0xFF800000> : vector<8xf32>
    %95 = vector.multi_reduction <maximumf>, %94, %cst_42 [1] : vector<8x8xf32> to vector<8xf32>
    %96 = vector.shape_cast %95 : vector<8xf32> to vector<8x1xf32>
    %97 = vector.broadcast %96 : vector<8x1xf32> to vector<8x8xf32>
    %98 = arith.subf %94, %97 : vector<8x8xf32>
    %99 = math.exp %98 : vector<8x8xf32>
    %cst_43 = arith.constant dense<0.000000e+00> : vector<8xf32>
    %100 = vector.multi_reduction <add>, %99, %cst_43 [1] : vector<8x8xf32> to vector<8xf32>
    %101 = vector.shape_cast %100 : vector<8xf32> to vector<8x1xf32>
    %102 = tpu.reciprocal %101 : vector<8x1xf32> -> vector<8x1xf32>
    %103 = vector.broadcast %102 : vector<8x1xf32> to vector<8x8xf32>
    %104 = arith.mulf %99, %103 : vector<8x8xf32>
    %cst_44 = arith.constant dense<0.000000e+00> : vector<8x8xf32>
    %105 = tpu.matmul %104, %93, %cst_44 {dimension_numbers = #tpu.dot_dimension_numbers<[1], [0], [0], [1], [0, 0, 1, 1], [], []>} : vector<8x8xf32>, vector<8x8xf32>, vector<8x8xf32> -> vector<8x8xf32>
    %c8_45 = arith.constant 8 : index
    %c8_46 = arith.constant 8 : index
    %106 = vector.load %arg8[%c8_45, %c8_46] : memref<16x32xf32, #tpu.memory_space<vmem>>, vector<8x8xf32>
    tpu.vector_store %arg8[%c8_45, %c8_46], %105 {strides = array<i32>} : memref<16x32xf32, #tpu.memory_space<vmem>>, vector<8x8xf32>,
    %107 = vector.extract_strided_slice %4 {offsets = [8, 16], sizes = [8, 8], strides = [1, 1]} : vector<16x32xf32> to vector<8x8xf32>
    %108 = vector.extract_strided_slice %7 {offsets = [8, 16], sizes = [8, 8], strides = [1, 1]} : vector<16x32xf32> to vector<8x8xf32>
    %109 = vector.extract_strided_slice %10 {offsets = [8, 16], sizes = [8, 8], strides = [1, 1]} : vector<16x32xf32> to vector<8x8xf32>
    %cst_47 = arith.constant dense<0.000000e+00> : vector<8x8xf32>
    %110 = tpu.matmul %107, %108, %cst_47 {dimension_numbers = #tpu.dot_dimension_numbers<[1], [1], [0], [0], [0, 0, 1, 0], [], []>} : vector<8x8xf32>, vector<8x8xf32>, vector<8x8xf32> -> vector<8x8xf32>
    %cst_48 = arith.constant dense<0xFF800000> : vector<8xf32>
    %111 = vector.multi_reduction <maximumf>, %110, %cst_48 [1] : vector<8x8xf32> to vector<8xf32>
    %112 = vector.shape_cast %111 : vector<8xf32> to vector<8x1xf32>
    %113 = vector.broadcast %112 : vector<8x1xf32> to vector<8x8xf32>
    %114 = arith.subf %110, %113 : vector<8x8xf32>
    %115 = math.exp %114 : vector<8x8xf32>
    %cst_49 = arith.constant dense<0.000000e+00> : vector<8xf32>
    %116 = vector.multi_reduction <add>, %115, %cst_49 [1] : vector<8x8xf32> to vector<8xf32>
    %117 = vector.shape_cast %116 : vector<8xf32> to vector<8x1xf32>
    %118 = tpu.reciprocal %117 : vector<8x1xf32> -> vector<8x1xf32>
    %119 = vector.broadcast %118 : vector<8x1xf32> to vector<8x8xf32>
    %120 = arith.mulf %115, %119 : vector<8x8xf32>
    %cst_50 = arith.constant dense<0.000000e+00> : vector<8x8xf32>
    %121 = tpu.matmul %120, %109, %cst_50 {dimension_numbers = #tpu.dot_dimension_numbers<[1], [0], [0], [1], [0, 0, 1, 1], [], []>} : vector<8x8xf32>, vector<8x8xf32>, vector<8x8xf32> -> vector<8x8xf32>
    %c8_51 = arith.constant 8 : index
    %c16_52 = arith.constant 16 : index
    %122 = vector.load %arg8[%c8_51, %c16_52] : memref<16x32xf32, #tpu.memory_space<vmem>>, vector<8x8xf32>
    tpu.vector_store %arg8[%c8_51, %c16_52], %121 {strides = array<i32>} : memref<16x32xf32, #tpu.memory_space<vmem>>, vector<8x8xf32>,
    %123 = vector.extract_strided_slice %4 {offsets = [8, 24], sizes = [8, 8], strides = [1, 1]} : vector<16x32xf32> to vector<8x8xf32>
    %124 = vector.extract_strided_slice %7 {offsets = [8, 24], sizes = [8, 8], strides = [1, 1]} : vector<16x32xf32> to vector<8x8xf32>
    %125 = vector.extract_strided_slice %10 {offsets = [8, 24], sizes = [8, 8], strides = [1, 1]} : vector<16x32xf32> to vector<8x8xf32>
    %cst_53 = arith.constant dense<0.000000e+00> : vector<8x8xf32>
    %126 = tpu.matmul %123, %124, %cst_53 {dimension_numbers = #tpu.dot_dimension_numbers<[1], [1], [0], [0], [0, 0, 1, 0], [], []>} : vector<8x8xf32>, vector<8x8xf32>, vector<8x8xf32> -> vector<8x8xf32>
    %cst_54 = arith.constant dense<0xFF800000> : vector<8xf32>
    %127 = vector.multi_reduction <maximumf>, %126, %cst_54 [1] : vector<8x8xf32> to vector<8xf32>
    %128 = vector.shape_cast %127 : vector<8xf32> to vector<8x1xf32>
    %129 = vector.broadcast %128 : vector<8x1xf32> to vector<8x8xf32>
    %130 = arith.subf %126, %129 : vector<8x8xf32>
    %131 = math.exp %130 : vector<8x8xf32>
    %cst_55 = arith.constant dense<0.000000e+00> : vector<8xf32>
    %132 = vector.multi_reduction <add>, %131, %cst_55 [1] : vector<8x8xf32> to vector<8xf32>
    %133 = vector.shape_cast %132 : vector<8xf32> to vector<8x1xf32>
    %134 = tpu.reciprocal %133 : vector<8x1xf32> -> vector<8x1xf32>
    %135 = vector.broadcast %134 : vector<8x1xf32> to vector<8x8xf32>
    %136 = arith.mulf %131, %135 : vector<8x8xf32>
    %cst_56 = arith.constant dense<0.000000e+00> : vector<8x8xf32>
    %137 = tpu.matmul %136, %125, %cst_56 {dimension_numbers = #tpu.dot_dimension_numbers<[1], [0], [0], [1], [0, 0, 1, 1], [], []>} : vector<8x8xf32>, vector<8x8xf32>, vector<8x8xf32> -> vector<8x8xf32>
    %c8_57 = arith.constant 8 : index
    %c24_58 = arith.constant 24 : index
    %138 = vector.load %arg8[%c8_57, %c24_58] : memref<16x32xf32, #tpu.memory_space<vmem>>, vector<8x8xf32>
    tpu.vector_store %arg8[%c8_57, %c24_58], %137 {strides = array<i32>} : memref<16x32xf32, #tpu.memory_space<vmem>>, vector<8x8xf32>,
    %c0_59 = arith.constant 0 : index
    %c0_60 = arith.constant 0 : index
    %139 = vector.load %arg8[%c0_59, %c0_60] : memref<16x32xf32, #tpu.memory_space<vmem>>, vector<16x32xf32>
    %c0_61 = arith.constant 0 : index
    %c0_62 = arith.constant 0 : index
    %140 = vector.load %arg6[%c0_61, %c0_62] : memref<32x32xf32, #tpu.memory_space<vmem>>, vector<32x32xf32>
    %cst_63 = arith.constant dense<0.000000e+00> : vector<16x32xf32>
    %141 = tpu.matmul %139, %140, %cst_63 {dimension_numbers = #tpu.dot_dimension_numbers<[1], [1], [0], [0], [0, 0, 1, 0], [], []>} : vector<16x32xf32>, vector<32x32xf32>, vector<16x32xf32> -> vector<16x32xf32>
    %c0_64 = arith.constant 0 : index
    %c0_65 = arith.constant 0 : index
    %142 = vector.load %arg7[%c0_64, %c0_65] : memref<16x32xf32, #tpu.memory_space<vmem>>, vector<16x32xf32>
    tpu.vector_store %arg7[%c0_64, %c0_65], %141 {strides = array<i32>} : memref<16x32xf32, #tpu.memory_space<vmem>>, vector<16x32xf32>,
    return
  }
}

</mosaic_0001>

<bundles_post_ra>
// kernel: tpu_custom_call.1
= control target key start
LH: loop header
LB: loop body
LE: loop exit
PB: predicated region body
PF: predicated region fallthrough
CT: control target
= control target key end

     0   :  { %12 = vsyncpa [#allocation4], 0  ;;  %s2809_s0 = inlined_call_operand.hbm [shape: f32[16,32], index: 0, kind: input, shape index: {}]   ;;  %s2810_s1 = inlined_call_operand.hbm [shape: f32[16,32], index: 1, kind: input, shape index: {}]   ;;  %s2811_s2 = inlined_call_operand.hbm [shape: f32[16,32], index: 2, kind: input, shape index: {}]   ;;  %s2812_s3 = inlined_call_operand.hbm [shape: f32[32,32], index: 3, kind: input, shape index: {}]   ;;  %s2813_s4 = inlined_call_operand.hbm [shape: f32[32,32], index: 4, kind: input, shape index: {}]   ;;  %s2814_s5 = inlined_call_operand.hbm [shape: f32[32,32], index: 5, kind: input, shape index: {}]   ;;  %s2815_s6 = inlined_call_operand.hbm [shape: f32[32,32], index: 6, kind: input, shape index: {}]   ;;  %s2816_s7 = inlined_call_operand.hbm [shape: f32[16,32], index: 7, kind: output, shape index: {}]  }
   0x1   :  { %13 = vsyncpa [#allocation7], 0 }
   0x2   :  { %14 = vsyncpa [#allocation10], 0 }
   0x3   :  { %15 = vsyncpa [#allocation13], 0 }
   0x4   :  { %16 = vsyncpa [#allocation5], 0  ;;  %s2402_s24 = smov [#allocation6]   ;;  %s2403_s26 = smov [#allocation9]  }
   0x5   :  { %s34_s25 = sshll.u32 %s2402_s24, 4  ;;  %s58_s27 = sshll.u32 %s2403_s26, 4  ;;  %s35_s25 = int_to_ptr.vmem [resolvable:$true] %s34_s25  ;;  %s2459_s27 = int_to_ptr.vmem [resolvable:$true] %s58_s27 }
   0x6   :  { %s2216_s30 = scalar_lea.hbm %s2810_s1, 256 }
   0x7   :  { %p2217_p0 = scmp.ne.s32.totalorder %s2810_s1, %s2216_s30  ;;  %p2220_p1 = scmp.lt.u32.totalorder %s2216_s30, %s2810_s1 }
   0x9   :  { %p2222_p2 = pnand %p2220_p1, %p2217_p0 }
   0xb   :  { %2225 = shalt.err (!%p2222_p2)
}
   0xc   :  { %s2226_s12 = scalar_lea.vmem %s35_s25, 256  ;;  %p2231_p4 = scmp.lt.s32.totalorder %s35_s25, %s35_s25 }
   0xd   :  { %p2227_p3 = scmp.ne.s32.totalorder %s35_s25, %s2226_s12  ;;  %p2232_p5 = scmp.lt.s32.totalorder %s2226_s12, %s2226_s12 }
   0xf   :  { %p2233_p6 = por %p2232_p5, %p2231_p4 }
  0x11   :  { %p2234_p7 = pnand %p2233_p6, %p2227_p3 }
  0x13   :  { %2237 = shalt.err (!%p2234_p7)
}
  0x14   :  { %s2404_s13 = smov 128   ;;  %s2405_s14 = smov 8  }
  0x15   :  { %40 = dma.hbm_to_vmem [thread:$0]  %s2810_s1, 256, %s35_s25, [#allocation7], %s2404_s13, %s2404_s13, %s2405_s14  }
  0x16   :  { %s2238_s19 = scalar_lea.hbm %s2812_s3, 512 }
  0x17   :  { %p2239_p8 = scmp.ne.s32.totalorder %s2812_s3, %s2238_s19  ;;  %p2242_p9 = scmp.lt.u32.totalorder %s2238_s19, %s2812_s3 }
  0x19   :  { %p2244_p10 = pnand %p2242_p9, %p2239_p8 }
  0x1b   :  { %2247 = shalt.err (!%p2244_p10)
}
  0x1c   :  { %s2248_s24 = scalar_lea.vmem %s2459_s27, 512  ;;  %p2253_p12 = scmp.lt.s32.totalorder %s2459_s27, %s2459_s27 }
  0x1d   :  { %p2249_p11 = scmp.ne.s32.totalorder %s2459_s27, %s2248_s24  ;;  %p2254_p13 = scmp.lt.s32.totalorder %s2248_s24, %s2248_s24 }
  0x1f   :  { %p2255_p0 = por %p2254_p13, %p2253_p12 }
  0x21   :  { %p2256_p1 = pnand %p2255_p0, %p2249_p11 }
  0x23   :  { %2259 = shalt.err (!%p2256_p1)
}
  0x24   :  { %64 = dma.hbm_to_vmem [thread:$0]  %s2812_s3, 512, %s2459_s27, [#allocation10], %s2404_s13, %s2404_s13, %s2405_s14  }
  0x25   :  { %s2406_s26 = smov [#allocation12]   ;;  %s2407_s29 = smov [#allocation3]  }
  0x26   :  { %s82_s28 = sshll.u32 %s2406_s26, 4  ;;  %s22_s30 = sshll.u32 %s2407_s29, 4  ;;  %s83_s28 = int_to_ptr.vmem [resolvable:$true] %s82_s28  ;;  %s2496_s30 = int_to_ptr.vmem [resolvable:$true] %s22_s30 }
  0x27   :  { %s2260_s10 = scalar_lea.hbm %s2814_s5, 512 }
  0x28   :  { %p2261_p2 = scmp.ne.s32.totalorder %s2814_s5, %s2260_s10  ;;  %p2264_p3 = scmp.lt.u32.totalorder %s2260_s10, %s2814_s5 }
  0x2a   :  { %p2266_p4 = pnand %p2264_p3, %p2261_p2 }
  0x2c   :  { %2269 = shalt.err (!%p2266_p4)
}
  0x2d   :  { %s2270_s3 = scalar_lea.vmem %s83_s28, 512  ;;  %p2275_p6 = scmp.lt.s32.totalorder %s83_s28, %s83_s28 }
  0x2e   :  { %p2271_p5 = scmp.ne.s32.totalorder %s83_s28, %s2270_s3  ;;  %p2276_p7 = scmp.lt.s32.totalorder %s2270_s3, %s2270_s3 }
  0x30   :  { %p2277_p8 = por %p2276_p7, %p2275_p6 }
  0x32   :  { %p2278_p9 = pnand %p2277_p8, %p2271_p5 }
  0x34   :  { %2281 = shalt.err (!%p2278_p9)
}
  0x35   :  { %88 = dma.hbm_to_vmem [thread:$0]  %s2814_s5, 512, %s83_s28, [#allocation13], %s2404_s13, %s2404_s13, %s2405_s14  }
  0x36   :  { %s2282_s20 = scalar_lea.hbm %s2809_s0, 256 }
  0x37   :  { %p2283_p10 = scmp.ne.s32.totalorder %s2809_s0, %s2282_s20  ;;  %p2286_p11 = scmp.lt.u32.totalorder %s2282_s20, %s2809_s0 }
  0x39   :  { %p2288_p12 = pnand %p2286_p11, %p2283_p10 }
  0x3b   :  { %2291 = shalt.err (!%p2288_p12)
}
  0x3c   :  { %s2292_s1 = scalar_lea.vmem %s2496_s30, 256  ;;  %p2297_p0 = scmp.lt.s32.totalorder %s2496_s30, %s2496_s30 }
  0x3d   :  { %p2293_p13 = scmp.ne.s32.totalorder %s2496_s30, %s2292_s1  ;;  %p2298_p1 = scmp.lt.s32.totalorder %s2292_s1, %s2292_s1 }
  0x3f   :  { %p2299_p2 = por %p2298_p1, %p2297_p0 }
  0x41   :  { %p2300_p3 = pnand %p2299_p2, %p2293_p13 }
  0x43   :  { %2303 = shalt.err (!%p2300_p3)
}
  0x44   :  { %28 = dma.hbm_to_vmem [thread:$0]  %s2809_s0, 256, %s2496_s30, [#allocation4], %s2404_s13, %s2404_s13, %s2405_s14  }
  0x45   :  { %s2408_s26 = smov [#allocation8]   ;;  %s2409_s29 = smov [#allocation11]  }
  0x46   :  { %s46_s28 = sshll.u32 %s2408_s26, 4  ;;  %s70_s8 = sshll.u32 %s2409_s29, 4  ;;  %s47_s28 = int_to_ptr.vmem [resolvable:$true] %s46_s28  ;;  %s2533_s8 = int_to_ptr.vmem [resolvable:$true] %s70_s8 }
  0x47   :  { %s2304_s11 = scalar_lea.hbm %s2811_s2, 256 }
  0x48   :  { %p2305_p4 = scmp.ne.s32.totalorder %s2811_s2, %s2304_s11  ;;  %p2308_p5 = scmp.lt.u32.totalorder %s2304_s11, %s2811_s2 }
  0x4a   :  { %p2310_p6 = pnand %p2308_p5, %p2305_p4 }
  0x4c   :  { %2313 = shalt.err (!%p2310_p6)
}
  0x4d   :  { %s2314_s0 = scalar_lea.vmem %s47_s28, 256  ;;  %p2319_p8 = scmp.lt.s32.totalorder %s47_s28, %s47_s28 }
  0x4e   :  { %p2315_p7 = scmp.ne.s32.totalorder %s47_s28, %s2314_s0  ;;  %p2320_p9 = scmp.lt.s32.totalorder %s2314_s0, %s2314_s0 }
  0x50   :  { %p2321_p10 = por %p2320_p9, %p2319_p8 }
  0x52   :  { %p2322_p11 = pnand %p2321_p10, %p2315_p7 }
  0x54   :  { %2325 = shalt.err (!%p2322_p11)
}
  0x55   :  { %52 = dma.hbm_to_vmem [thread:$0]  %s2811_s2, 256, %s47_s28, [#allocation7], %s2404_s13, %s2404_s13, %s2405_s14  }
  0x56   :  { %s2326_s19 = scalar_lea.hbm %s2813_s4, 512 }
  0x57   :  { %p2327_p12 = scmp.ne.s32.totalorder %s2813_s4, %s2326_s19  ;;  %p2330_p13 = scmp.lt.u32.totalorder %s2326_s19, %s2813_s4 }
  0x59   :  { %p2332_p0 = pnand %p2330_p13, %p2327_p12 }
  0x5b   :  { %2335 = shalt.err (!%p2332_p0)
}
  0x5c   :  { %s2336_s24 = scalar_lea.vmem %s2533_s8, 512  ;;  %p2341_p2 = scmp.lt.s32.totalorder %s2533_s8, %s2533_s8 }
  0x5d   :  { %p2337_p1 = scmp.ne.s32.totalorder %s2533_s8, %s2336_s24  ;;  %p2342_p3 = scmp.lt.s32.totalorder %s2336_s24, %s2336_s24 }
  0x5f   :  { %p2343_p4 = por %p2342_p3, %p2341_p2 }
  0x61   :  { %p2344_p5 = pnand %p2343_p4, %p2337_p1 }
  0x63   :  { %2347 = shalt.err (!%p2344_p5)
}
  0x64   :  { %76 = dma.hbm_to_vmem [thread:$0]  %s2813_s4, 512, %s2533_s8, [#allocation10], %s2404_s13, %s2404_s13, %s2405_s14  }
  0x65   :  { %s2410_s5 = smov [#allocation14]   ;;  %s2348_s29 = scalar_lea.hbm %s2815_s6, 512 }
  0x66   :  { %s94_s25 = sshll.u32 %s2410_s5, 4  ;;  %p2349_p6 = scmp.ne.s32.totalorder %s2815_s6, %s2348_s29  ;;  %s95_s25 = int_to_ptr.vmem [resolvable:$true] %s94_s25 }
  0x67   :  { %p2352_p7 = scmp.lt.u32.totalorder %s2348_s29, %s2815_s6 }
  0x69   :  { %p2354_p8 = pnand %p2352_p7, %p2349_p6 }
  0x6b   :  { %2357 = shalt.err (!%p2354_p8)
}
  0x6c   :  { %s2358_s15 = scalar_lea.vmem %s95_s25, 512  ;;  %p2363_p10 = scmp.lt.s32.totalorder %s95_s25, %s95_s25 }
  0x6d   :  { %p2359_p9 = scmp.ne.s32.totalorder %s95_s25, %s2358_s15  ;;  %p2364_p11 = scmp.lt.s32.totalorder %s2358_s15, %s2358_s15 }
  0x6f   :  { %p2365_p12 = por %p2364_p11, %p2363_p10 }
  0x71   :  { %p2366_p13 = pnand %p2365_p12, %p2359_p9 }
  0x73   :  { %2369 = shalt.err (!%p2366_p13)
}
  0x74   :  { %100 = dma.hbm_to_vmem [thread:$0]  %s2815_s6, 512, %s95_s25, [#allocation13], %s2404_s13, %s2404_s13, %s2405_s14  }
  0x75   :  { %2392 = dma.done.wait [#allocation4], 256  }
  0x76   :  { %2393 = vsyncadd [#allocation4], 4294967040 }
  0x77   :  { %2394 = dma.done.wait [#allocation7], 512  }
  0x78   :  { %2395 = vsyncadd [#allocation7], 4294966784 }
  0x79   :  { %2396 = dma.done.wait [#allocation10], 1024  }
  0x7a   :  { %2397 = vsyncadd [#allocation10], 4294966272 }
  0x7b   :  { %2398 = dma.done.wait [#allocation13], 1024  }
  0x7c   :  { %2399 = vsyncadd [#allocation13], 4294966272  ;;  %vm128_vm0 = vcmask 261120   ;;  %v226_v1 = vld [vmem:[#allocation11] sm:$0xff]  ;;  %v227_v2 = vld [vmem:[#allocation11 + $0x8] sm:$0xff]  ;;  %v2411_v25 = vmov 0.0  }
  0x7d   :  { %vm2587_vm1 = vmpackc.low %vm128_vm0, %vm128_vm0  ;;  %v124_v3 = vld [vmem:[#allocation9] sm:$0xff]  ;;  %v2131_v4 = vpack.c.bf16 %v227_v2, %v226_v1  ;;  %v125_v5 = vld [vmem:[#allocation9 + $0x8] sm:$0xff]  ;;  %vm2412_vm2 = vmmov 0   ;;  %vm422_vm3 = vcmask 64512   ;;  %s2413_s6 = smov 120   ;;  %s2414_s16 = smov 112  }
  0x7e   :  { %v228_v6 = vld [vmem:[#allocation11 + $0x10] sm:$0xff]  ;;  %v229_v7 = vld [vmem:[#allocation11 + $0x18] sm:$0xff]  ;;  %v2119_v8 = vpack.c.bf16 %v125_v5, %v124_v3  ;;  %v224_v12 = vld [vmem:[#allocation6] sm:$0xff]  ;;  %s2415_s3 = smov 104   ;;  %s2416_s0 = smov 16   ;;  %vm754_vm4 = vcmask 130112  }
  0x7f   :  { %v2137_v9 = vpack.c.bf16 %v229_v7, %v228_v6  ;;  %v126_v10 = vld [vmem:[#allocation9 + $0x10] sm:$0xff]  ;;  %v127_v11 = vld [vmem:[#allocation9 + $0x18] sm:$0xff]  ;;  %2133 = vmatprep.subr.msk.bf16.mxu1 %vm2587_vm1, %v2131_v4  ;;  %2014 = vmatprep.mubr.msk.f32.mxu1 %vm128_vm0, %v224_v12  ;;  %v325_v15 = vld [vmem:[#allocation12] sm:$0xff]  ;;  %vm925_vm5 = vcmask 195712   ;;  %s2417_s30 = smov 24   ;;  %vm1096_vm6 = vcmask 261312  }
  0x80   :  { %v2125_v13 = vpack.c.bf16 %v127_v11, %v126_v10  ;;  %v122_v14 = vld [vmem:[#allocation3] sm:$0xff]  ;;  %2121 = vmatprep.subr.msk.bf16.mxu0 %vm2587_vm1, %v2119_v8  ;;  %2136 = vmatpush3.bf16.xpose.msk.msra.mxu1 %vm2587_vm1, %v2131_v4  ;;  %v326_v16 = vld [vmem:[#allocation12 + $0x8] sm:$0xff]  ;;  %v328_v19 = vld [vmem:[#allocation12 + $0x18] sm:$0xff]  ;;  %s2418_s27 = smov [#allocation15]  }
  0x81   :  { %2124 = vmatpush3.bf16.xpose.msk.msra.mxu0 %vm2587_vm1, %v2119_v8  ;;  %2139 = vmatprep.subr.msk.bf16.mxu1 %vm2587_vm1, %v2137_v9  ;;  %v2143_v17 = vpack.c.bf16 %v326_v16, %v325_v15  ;;  %v327_v18 = vld [vmem:[#allocation12 + $0x10] sm:$0xff]  ;;  %v225_v20 = vld [vmem:[#allocation6 + $0x8] sm:$0xff]  ;;  %v123_v21 = vld [vmem:[#allocation3 + $0x8] sm:$0xff]  ;;  %s1876_s17 = sshll.u32 %s2418_s27, 4  ;;  %s1877_s17 = int_to_ptr.vmem [resolvable:$true] %s1876_s17 }
  0x82   :  { %2127 = vmatprep.subr.msk.bf16.mxu0 %vm2587_vm1, %v2125_v13  ;;  %2003 = vmatprep.mubr.msk.f32.mxu0 %vm128_vm0, %v122_v14  ;;  %v2149_v22 = vpack.c.bf16 %v328_v19, %v327_v18  ;;  %v323_v23 = vld [vmem:[#allocation8] sm:$0xff]  ;;  %v324_v24 = vld [vmem:[#allocation8 + $0x8] sm:$0xff]  ;;  %s2370_s18 = scalar_lea.vmem %s1877_s17, 256  ;;  %p2375_p1 = scmp.lt.s32.totalorder %s1877_s17, %s1877_s17 }
  0x83   :  { %p2371_p0 = scmp.ne.s32.totalorder %s1877_s17, %s2370_s18  ;;  %p2376_p2 = scmp.lt.s32.totalorder %s2370_s18, %s2370_s18 }
  0x85   :  { %p2377_p3 = por %p2376_p2, %p2375_p1 }
  0x87   :  { %p2378_p4 = pnand %p2377_p3, %p2371_p0 }
  0x88   :  { %2142 = vmatpush3.bf16.xpose.msk.msra.mxu1 %vm2587_vm1, %v2137_v9 }
  0x89   :  { %2130 = vmatpush3.bf16.xpose.msk.msra.mxu0 %vm2587_vm1, %v2125_v13  ;;  %2028 = vmatprep.subr.mxu1 %v2411_v25 }
  0x8a   :  { %2145 = vmatprep.subr.msk.bf16.mxu0 %vm2587_vm1, %v2143_v17 }
  0x8f   :  { %2015 = vmatmul.mubr.msk.f32.vlgmr.msra.gmra.mrb[0].mxu1 %vm128_vm0, %v225_v20 }
  0x90   :  { %2004 = vmatmul.mubr.msk.f32.vlgmr.msra.gmra.mrb[0].mxu0 %vm128_vm0, %v123_v21  ;;  %2030 = vmatprep.mubr.msk.f32.mxu1 %vm2412_vm2, %v2411_v25 }
  0x91   :  { %2148 = vmatpush3.bf16.xpose.msk.msra.mxu0 %vm2587_vm1, %v2143_v17  ;;  %2025 = vmatprep.mubr.msk.f32.mxu0 %vm128_vm0, %v323_v23 }
  0x92   :  { %2151 = vmatprep.subr.msk.bf16.mxu0 %vm2587_vm1, %v2149_v22 }
  0x99   :  { %2154 = vmatpush3.bf16.xpose.msk.msra.mxu0 %vm2587_vm1, %v2149_v22 }
  0x9a   :  { %2068 = vmatprep.subr.mxu0 %v2411_v25 }
  0xa0   :  { %2026 = vmatmul.mubr.msk.f32.vlgmr.msra.gmra.mrb[2].mxu0 %vm128_vm0, %v324_v24 }
  0xa1   :  { %2070 = vmatprep.mubr.msk.f32.mxu0 %vm2412_vm2, %v2411_v25 }
 0x162   :  { %v2627_v26 = vpop.f32.mrb[0].mxu1 }
 0x163   :  { %v2005_v27 = vpop.f32.mrb[0].mxu0  ;;  %v2629_v28 = vpop.f32.mrb[1].mxu1  ;;  %2069 = vmatpush3.xpose.msk.msra.mxu0 %vm422_vm3, %v2627_v26 }
 0x164   :  { %v2633_v29 = vmul.f32 0.35355338, %v2005_v27  ;;  %586 = vrot.lane.b32.xlu1 %v2629_v28, %s2413_s6  ;;  %v213_v30 = vpop.f32.mrb[1].mxu0  ;;  %2029 = vmatpush3.xpose.msk.msra.mxu1 %vm422_vm3, %v2629_v28 }
 0x165   :  { %v222_v31 = vmul.f32 0.35355338, %v213_v30  ;;  %2033 = vmatprep.subr.mxu1 %v2411_v25  ;;  %2078 = vmatprep.subr.mxu0 %v2411_v25 }
 0x166   :  { %2071 = vmatmul.mubr.msk.f32.vlgmr.msra.gmra.mrb[4].mxu0 %vm422_vm3, %v2633_v29 }
 0x167   :  { %2031 = vmatmul.mubr.msk.f32.vlgmr.msra.gmra.mrb[2].mxu1 %vm422_vm3, %v222_v31  ;;  %2080 = vmatprep.mubr.msk.f32.mxu0 %vm2412_vm2, %v2411_v25 }
 0x168   :  { %584 = vrot.lane.b32.xlu1 %v222_v31, %s2413_s6  ;;  %2035 = vmatprep.mubr.msk.f32.mxu1 %vm2412_vm2, %v2411_v25 }
 0x173   :  { %v2649_v32 = vpop.f32.mrb[2].mxu0 }
 0x174   :  { %v2651_v33 = vpop.f32.mrb[3].mxu0 }
 0x175   :  { %2034 = vmatpush3.msra.mxu1 %v2651_v33 }
 0x176   :  { %2038 = vmatprep.subr.mxu1 %v2411_v25 }
 0x1d6   :  { %v587_v46 = vpop.permute.xlu1 %586 }
 0x1da   :  { %v585_v48 = vpop.permute.xlu1 %584 }
 0x239   :  { %v2655_v34 = vpop.f32.mrb[4].mxu0 }
 0x23a   :  { %v495_v35 = vpop.f32.mrb[2].mxu1  ;;  %v2072_v36 = vpop.f32.mrb[5].mxu0  ;;  %v1174_v8 = vsel %vm422_vm3, %v2655_v34, -inf }
 0x23b   :  { %v2032_v37 = vpop.f32.mrb[3].mxu1  ;;  %v499_v38 = vsel %vm422_vm3, %v495_v35, -inf }
 0x23c   :  { %500 = vmax.xlane.f32.xlu0 %v499_v38 }
 0x2c9   :  { %v501_v39 = vpop.xlane.xlu0 %500 }
 0x2ca   :  { %v502_v40 = vsub.f32 %v495_v35, %v501_v39 }
 0x2cc   :  { %v503_v41 = vmul.f32 1.442695, %v502_v40 }
 0x2ce   :  { %2184 = vpow2.f32 %v503_v41 }
 0x2d8   :  { %v2185_v42 = vpop.eup %2184 }
 0x2d9   :  { %v505_v43 = vsel %vm422_vm3, %v2185_v42, 0.0 }
 0x2da   :  { %506 = vadd.xlane.f32.xlu0 %v505_v43 }
 0x367   :  { %v507_v44 = vpop.xlane.xlu0 %506 }
 0x368   :  { %2186 = vrcp.f32 %v507_v44 }
 0x372   :  { %v2187_v45 = vpop.eup %2186 }
 0x373   :  { %v509_v47 = vmul.f32 %v2187_v45, %v2185_v42 }
 0x375   :  { %2036 = vmatmul.mubr.msk.f32.vlgmr.msra.gmra.mrb[4].mxu1 %vm422_vm3, %v509_v47 }
 0x376   :  { %2039 = vmatpush3.xpose.msk.msra.mxu1 %vm422_vm3, %v587_v46  ;;  %2040 = vmatprep.mubr.msk.f32.mxu1 %vm2412_vm2, %v2411_v25 }
 0x377   :  { %2043 = vmatprep.subr.mxu1 %v2411_v25 }
 0x379   :  { %2041 = vmatmul.mubr.msk.f32.vlgmr.msra.gmra.mrb[6].mxu1 %vm422_vm3, %v585_v48 }
 0x37a   :  { %2045 = vmatprep.mubr.msk.f32.mxu1 %vm2412_vm2, %v2411_v25 }
 0x448   :  { %v579_v49 = vpop.f32.mrb[4].mxu1 }
 0x449   :  { %583 = vst.msk [vmem:[#allocation2] sm:$0xff] %vm422_vm3, %v579_v49  ;;  %v2037_v50 = vpop.f32.mrb[5].mxu1 }
 0x44c   :  { %v658_v51 = vpop.f32.mrb[6].mxu1 }
 0x44d   :  { %v2042_v52 = vpop.f32.mrb[7].mxu1  ;;  %v662_v53 = vsel %vm422_vm3, %v658_v51, -inf }
 0x44e   :  { %663 = vmax.xlane.f32.xlu0 %v662_v53 }
 0x464   :  { %674 = vrot.lane.b32.xlu0 %v2651_v33, %s2413_s6 }
 0x468   :  { %758 = vrot.lane.b32.xlu0 %v2629_v28, %s2414_s16 }
 0x46c   :  { %756 = vrot.lane.b32.xlu0 %v222_v31, %s2414_s16 }
 0x4db   :  { %v664_v54 = vpop.xlane.xlu0 %663 }
 0x4dc   :  { %v665_v55 = vsub.f32 %v658_v51, %v664_v54 }
 0x4de   :  { %v666_v56 = vmul.f32 1.442695, %v665_v55 }
 0x4df   :  { %v675_v57 = vpop.permute.xlu0 %674 }
 0x4e0   :  { %2188 = vpow2.f32 %v666_v56  ;;  %2044 = vmatpush3.msra.mxu1 %v675_v57 }
 0x4e1   :  { %2048 = vmatprep.subr.mxu1 %v2411_v25 }
 0x4e3   :  { %v759_v62 = vpop.permute.xlu0 %758 }
 0x4e7   :  { %v757_v1 = vpop.permute.xlu0 %756 }
 0x4ea   :  { %v2189_v58 = vpop.eup %2188 }
 0x4eb   :  { %v668_v59 = vsel %vm422_vm3, %v2189_v58, 0.0 }
 0x4ec   :  { %669 = vadd.xlane.f32.xlu1 %v668_v59 }
 0x4fd   :  { %845 = vrot.lane.b32.xlu1 %v2651_v33, %s2414_s16 }
 0x501   :  { %929 = vrot.lane.b32.xlu1 %v2629_v28, %s2415_s3 }
 0x505   :  { %927 = vrot.lane.b32.xlu1 %v222_v31, %s2415_s3 }
 0x509   :  { %1259 = vrot.lane.b32.xlu1 %v2633_v29, %s2413_s6 }
 0x579   :  { %v670_v60 = vpop.xlane.xlu1 %669 }
 0x57a   :  { %2190 = vrcp.f32 %v670_v60 }
 0x57d   :  { %v846_v2 = vpop.permute.xlu1 %845 }
 0x581   :  { %v930_v9 = vpop.permute.xlu1 %929 }
 0x584   :  { %v2191_v61 = vpop.eup %2190 }
 0x585   :  { %v672_v63 = vmul.f32 %v2191_v61, %v2189_v58  ;;  %v928_v11 = vpop.permute.xlu1 %927 }
 0x587   :  { %2046 = vmatmul.mubr.msk.f32.vlgmr.msra.gmra.mrb[8].mxu1 %vm422_vm3, %v672_v63 }
 0x588   :  { %2049 = vmatpush3.xpose.msk.msra.mxu1 %vm422_vm3, %v759_v62  ;;  %2050 = vmatprep.mubr.msk.f32.mxu1 %vm2412_vm2, %v2411_v25 }
 0x589   :  { %2053 = vmatprep.subr.mxu1 %v2411_v25  ;;  %v1260_v15 = vpop.permute.xlu1 %1259 }
 0x58b   :  { %2051 = vmatmul.mubr.msk.f32.vlgmr.msra.gmra.mrb[10].mxu1 %vm422_vm3, %v757_v1 }
 0x58c   :  { %2054 = vmatpush3.msra.mxu1 %v846_v2  ;;  %2055 = vmatprep.mubr.msk.f32.mxu1 %vm2412_vm2, %v2411_v25 }
 0x58d   :  { %2058 = vmatprep.subr.mxu1 %v2411_v25 }
 0x65a   :  { %v2692_v3 = vpop.f32.mrb[8].mxu1 }
 0x65b   :  { %v2047_v4 = vpop.f32.mrb[9].mxu1 }
 0x65e   :  { %v830_v5 = vpop.f32.mrb[10].mxu1 }
 0x65f   :  { %v2052_v6 = vpop.f32.mrb[11].mxu1  ;;  %v834_v7 = vsel %vm422_vm3, %v830_v5, -inf }
 0x660   :  { %835 = vmax.xlane.f32.xlu0 %v834_v7 }
 0x676   :  { %1261 = vrot.lane.b32.xlu0 %v2627_v26, %s2413_s6 }
 0x695   :  { %1175 = vmax.xlane.f32.xlu0 %v1174_v8 }
 0x6ed   :  { %v836_v10 = vpop.xlane.xlu0 %835 }
 0x6ee   :  { %v837_v12 = vsub.f32 %v830_v5, %v836_v10 }
 0x6f0   :  { %v838_v13 = vmul.f32 1.442695, %v837_v12 }
 0x6f1   :  { %v1262_v14 = vpop.permute.xlu0 %1261 }
 0x6f2   :  { %2192 = vpow2.f32 %v838_v13  ;;  %2079 = vmatpush3.xpose.msk.msra.mxu0 %vm422_vm3, %v1262_v14 }
 0x6f3   :  { %2088 = vmatprep.subr.mxu0 %v2411_v25 }
 0x6f5   :  { %2081 = vmatmul.mubr.msk.f32.vlgmr.msra.gmra.mrb[6].mxu0 %vm422_vm3, %v1260_v15 }
 0x6f6   :  { %2090 = vmatprep.mubr.msk.f32.mxu0 %vm2412_vm2, %v2411_v25 }
 0x6fc   :  { %v2193_v16 = vpop.eup %2192 }
 0x6fd   :  { %v840_v17 = vsel %vm422_vm3, %v2193_v16, 0.0 }
 0x6fe   :  { %841 = vadd.xlane.f32.xlu1 %v840_v17 }
 0x70f   :  { %1432 = vrot.lane.b32.xlu1 %v2627_v26, %s2414_s16 }
 0x713   :  { %1430 = vrot.lane.b32.xlu1 %v2633_v29, %s2414_s16 }
 0x717   :  { %1602 = vrot.lane.b32.xlu1 %v2627_v26, %s2415_s3 }
 0x71b   :  { %1600 = vrot.lane.b32.xlu1 %v2633_v29, %s2415_s3 }
 0x722   :  { %v1176_v29 = vpop.xlane.xlu0 %1175 }
 0x723   :  { %v1177_v30 = vsub.f32 %v2655_v34, %v1176_v29  ;;  %v1774_v29 = vld [vmem:[#allocation14 + $0x10] sm:$0xff] }
 0x725   :  { %v1178_v35 = vmul.f32 1.442695, %v1177_v30  ;;  %v1775_v30 = vld [vmem:[#allocation14 + $0x18] sm:$0xff] }
 0x78b   :  { %v842_v18 = vpop.xlane.xlu1 %841 }
 0x78c   :  { %2194 = vrcp.f32 %v842_v18 }
 0x78d   :  { %2196 = vpow2.f32 %v1178_v35 }
 0x78f   :  { %v1433_v19 = vpop.permute.xlu1 %1432 }
 0x790   :  { %2089 = vmatpush3.xpose.msk.msra.mxu0 %vm422_vm3, %v1433_v19 }
 0x791   :  { %2098 = vmatprep.subr.mxu0 %v2411_v25 }
 0x793   :  { %v1431_v20 = vpop.permute.xlu1 %1430 }
 0x794   :  { %2091 = vmatmul.mubr.msk.f32.vlgmr.msra.gmra.mrb[8].mxu0 %vm422_vm3, %v1431_v20 }
 0x795   :  { %2100 = vmatprep.mubr.msk.f32.mxu0 %vm2412_vm2, %v2411_v25 }
 0x796   :  { %v2195_v21 = vpop.eup %2194 }
 0x797   :  { %v844_v22 = vmul.f32 %v2195_v21, %v2193_v16  ;;  %v1603_v23 = vpop.permute.xlu1 %1602  ;;  %v2731_v46 = vpop.eup %2196 }
 0x798   :  { %2099 = vmatpush3.xpose.msk.msra.mxu0 %vm422_vm3, %v1603_v23  ;;  %v1180_v48 = vsel %vm422_vm3, %v2731_v46, 0.0  ;;  %v1772_v23 = vld [vmem:[#allocation14] sm:$0xff] }
 0x799   :  { %2056 = vmatmul.mubr.msk.f32.vlgmr.msra.gmra.mrb[12].mxu1 %vm422_vm3, %v844_v22 }
 0x79a   :  { %2059 = vmatpush3.xpose.msk.msra.mxu1 %vm422_vm3, %v930_v9  ;;  %2060 = vmatprep.mubr.msk.f32.mxu1 %vm2412_vm2, %v2411_v25 }
 0x79b   :  { %v1601_v24 = vpop.permute.xlu1 %1600  ;;  %2063 = vmatprep.subr.mxu1 %v2411_v25 }
 0x79c   :  { %2101 = vmatmul.mubr.msk.f32.vlgmr.msra.gmra.mrb[10].mxu0 %vm422_vm3, %v1601_v24  ;;  %v1773_v24 = vld [vmem:[#allocation14 + $0x8] sm:$0xff] }
 0x79d   :  { %2061 = vmatmul.mubr.msk.f32.vlgmr.msra.gmra.mrb[14].mxu1 %vm422_vm3, %v928_v11 }
 0x79e   :  { %2065 = vmatprep.mubr.msk.f32.mxu1 %vm2412_vm2, %v2411_v25 }
 0x7c8   :  { %v1333_v26 = vpop.f32.mrb[6].mxu0 }
 0x7c9   :  { %v2082_v27 = vpop.f32.mrb[7].mxu0  ;;  %v1337_v28 = vsel %vm422_vm3, %v1333_v26, -inf }
 0x7ca   :  { %1338 = vmax.xlane.f32.xlu0 %v1337_v28 }
 0x857   :  { %v1339_v31 = vpop.xlane.xlu0 %1338 }
 0x858   :  { %v1340_v36 = vsub.f32 %v1333_v26, %v1339_v31  ;;  %v2155_v26 = vpack.c.bf16 %v1773_v24, %v1772_v23 }
 0x85a   :  { %v1341_v38 = vmul.f32 1.442695, %v1340_v36  ;;  %2157 = vmatprep.subr.msk.bf16.mxu0 %vm2587_vm1, %v2155_v26 }
 0x85b   :  { %2160 = vmatpush3.bf16.xpose.msk.msra.mxu0 %vm2587_vm1, %v2155_v26 }
 0x85c   :  { %2198 = vpow2.f32 %v1341_v38 }
 0x866   :  { %v2737_v50 = vpop.eup %2198 }
 0x867   :  { %v1504_v37 = vpop.f32.mrb[8].mxu0  ;;  %v1343_v51 = vsel %vm422_vm3, %v2737_v50, 0.0 }
 0x868   :  { %v2092_v39 = vpop.f32.mrb[9].mxu0  ;;  %v1508_v49 = vsel %vm422_vm3, %v1504_v37, -inf }
 0x86c   :  { %v917_v40 = vpop.f32.mrb[12].mxu1 }
 0x86d   :  { %v2057_v41 = vpop.f32.mrb[13].mxu1 }
 0x86f   :  { %v1674_v42 = vpop.f32.mrb[10].mxu0 }
 0x870   :  { %v1001_v43 = vpop.f32.mrb[14].mxu1  ;;  %v2102_v44 = vpop.f32.mrb[11].mxu0  ;;  %v1678_v45 = vsel %vm422_vm3, %v1674_v42, -inf }
 0x871   :  { %1679 = vmax.xlane.f32.xlu0 %v1678_v45  ;;  %v2062_v47 = vpop.f32.mrb[15].mxu1  ;;  %v1005_v34 = vsel %vm422_vm3, %v1001_v43, -inf }
 0x872   :  { %1006 = vmax.xlane.f32.xlu1 %v1005_v34 }
 0x875   :  { %1181 = vadd.xlane.f32.xlu0 %v1180_v48 }
 0x876   :  { %1509 = vmax.xlane.f32.xlu1 %v1508_v49 }
 0x87a   :  { %1344 = vadd.xlane.f32.xlu1 %v1343_v51 }
 0x8fe   :  { %v1680_v52 = vpop.xlane.xlu0 %1679 }
 0x8ff   :  { %v1681_v53 = vsub.f32 %v1674_v42, %v1680_v52  ;;  %v1007_v54 = vpop.xlane.xlu1 %1006 }
 0x900   :  { %v1008_v55 = vsub.f32 %v1001_v43, %v1007_v54 }
 0x901   :  { %v1682_v56 = vmul.f32 1.442695, %v1681_v53 }
 0x902   :  { %v1009_v57 = vmul.f32 1.442695, %v1008_v55  ;;  %v1182_v7 = vpop.xlane.xlu0 %1181 }
 0x903   :  { %2200 = vpow2.f32 %v1682_v56  ;;  %v1510_v58 = vpop.xlane.xlu1 %1509 }
 0x904   :  { %v1511_v59 = vsub.f32 %v1504_v37, %v1510_v58  ;;  %2202 = vpow2.f32 %v1009_v57 }
 0x906   :  { %v1512_v60 = vmul.f32 1.442695, %v1511_v59 }
 0x907   :  { %v1345_v5 = vpop.xlane.xlu1 %1344 }
 0x908   :  { %2204 = vpow2.f32 %v1512_v60 }
 0x90d   :  { %v2201_v61 = vpop.eup %2200 }
 0x90e   :  { %v1684_v62 = vsel %vm422_vm3, %v2201_v61, 0.0  ;;  %v2203_v63 = vpop.eup %2202 }
 0x90f   :  { %1685 = vadd.xlane.f32.xlu1 %v1684_v62  ;;  %v1011_v2 = vsel %vm422_vm3, %v2203_v63, 0.0 }
 0x912   :  { %v2205_v1 = vpop.eup %2204 }
 0x913   :  { %1012 = vadd.xlane.f32.xlu1 %v1011_v2  ;;  %v1514_v4 = vsel %vm422_vm3, %v2205_v1, 0.0 }
 0x914   :  { %1515 = vadd.xlane.f32.xlu0 %v1514_v4 }
 0x924   :  { %1349 = vrot.lane.b32.xlu1 %v2649_v32, %s2413_s6 }
 0x928   :  { %1519 = vrot.lane.b32.xlu1 %v2649_v32, %s2414_s16 }
 0x92a   :  { %1016 = vrot.lane.b32.xlu0 %v2651_v33, %s2415_s3 }
 0x92c   :  { %751 = vrot.lane.b32.xlu1 %v2692_v3, %s2405_s14 }
 0x92e   :  { %1689 = vrot.lane.b32.xlu0 %v2649_v32, %s2415_s3 }
 0x932   :  { %922 = vrot.lane.b32.xlu0 %v917_v40, %s2416_s0 }
 0x99c   :  { %v1686_v6 = vpop.xlane.xlu1 %1685 }
 0x9a0   :  { %v1013_v8 = vpop.xlane.xlu1 %1012 }
 0x9a1   :  { %2206 = vrcp.f32 %v1013_v8  ;;  %v1516_v9 = vpop.xlane.xlu0 %1515 }
 0x9a2   :  { %2208 = vrcp.f32 %v1182_v7 }
 0x9a3   :  { %2210 = vrcp.f32 %v1345_v5 }
 0x9a4   :  { %v1350_v10 = vpop.permute.xlu1 %1349  ;;  %2212 = vrcp.f32 %v1516_v9 }
 0x9a5   :  { %v1017_v11 = vpop.permute.xlu0 %1016  ;;  %2214 = vrcp.f32 %v1686_v6 }
 0x9a6   :  { %2064 = vmatpush3.msra.mxu1 %v1017_v11 }
 0x9a7   :  { %2073 = vmatprep.subr.mxu1 %v2411_v25 }
 0x9a8   :  { %v1520_v33 = vpop.permute.xlu1 %1519 }
 0x9a9   :  { %v1690_v3 = vpop.permute.xlu0 %1689 }
 0x9ab   :  { %v2207_v12 = vpop.eup %2206 }
 0x9ac   :  { %v1015_v13 = vmul.f32 %v2207_v12, %v2203_v63  ;;  %v752_v14 = vpop.permute.xlu1 %751  ;;  %v2209_v15 = vpop.eup %2208 }
 0x9ad   :  { %755 = vst.msk [vmem:[#allocation2] sm:$0xff] %vm754_vm4, %v752_v14  ;;  %v923_v16 = vpop.permute.xlu0 %922  ;;  %v1184_v17 = vmul.f32 %v2209_v15, %v2731_v46  ;;  %v2211_v18 = vpop.eup %2210 }
 0x9ae   :  { %926 = vst.msk [vmem:[#allocation2] sm:$0xff] %vm925_vm5, %v923_v16  ;;  %2066 = vmatmul.mubr.msk.f32.vlgmr.msra.gmra.mrb[16].mxu1 %vm422_vm3, %v1015_v13  ;;  %v1347_v19 = vmul.f32 %v2211_v18, %v2737_v50  ;;  %v2213_v20 = vpop.eup %2212 }
 0x9af   :  { %2074 = vmatpush3.msra.mxu1 %v2649_v32  ;;  %2075 = vmatprep.mubr.msk.f32.mxu1 %vm2412_vm2, %v2411_v25  ;;  %v1518_v32 = vmul.f32 %v2213_v20, %v2205_v1  ;;  %v2215_v21 = vpop.eup %2214 }
 0x9b0   :  { %2083 = vmatprep.subr.mxu1 %v2411_v25  ;;  %v1688_v22 = vmul.f32 %v2215_v21, %v2201_v61 }
 0x9b2   :  { %2076 = vmatmul.mubr.msk.f32.vlgmr.msra.gmra.mrb[18].mxu1 %vm422_vm3, %v1184_v17 }
 0x9b3   :  { %2084 = vmatpush3.msra.mxu1 %v1350_v10  ;;  %2085 = vmatprep.mubr.msk.f32.mxu1 %vm2412_vm2, %v2411_v25 }
 0x9b4   :  { %2093 = vmatprep.subr.mxu1 %v2411_v25 }
 0x9b6   :  { %2086 = vmatmul.mubr.msk.f32.vlgmr.msra.gmra.mrb[20].mxu1 %vm422_vm3, %v1347_v19 }
 0x9b7   :  { %2094 = vmatpush3.msra.mxu1 %v1520_v33  ;;  %2095 = vmatprep.mubr.msk.f32.mxu1 %vm2412_vm2, %v2411_v25 }
 0x9b8   :  { %2103 = vmatprep.subr.mxu1 %v2411_v25 }
 0x9ba   :  { %2096 = vmatmul.mubr.msk.f32.vlgmr.msra.gmra.mrb[22].mxu1 %vm422_vm3, %v1518_v32 }
 0x9bb   :  { %2104 = vmatpush3.msra.mxu1 %v1690_v3  ;;  %2105 = vmatprep.mubr.msk.f32.mxu1 %vm2412_vm2, %v2411_v25  ;;  %v2161_v25 = vpack.c.bf16 %v1775_v30, %v1774_v29 }
 0x9bd   :  { %2163 = vmatprep.subr.msk.bf16.mxu0 %vm2587_vm1, %v2161_v25 }
 0x9be   :  { %2106 = vmatmul.mubr.msk.f32.vlgmr.msra.gmra.mrb[24].mxu1 %vm422_vm3, %v1688_v22  ;;  %2166 = vmatpush3.bf16.xpose.msk.msra.mxu0 %vm2587_vm1, %v2161_v25 }
 0xa81   :  { %v1088_v27 = vpop.f32.mrb[16].mxu1 }
 0xa82   :  { %1093 = vrot.lane.b32.xlu0 %v1088_v27, %s2417_s30  ;;  %v2067_v28 = vpop.f32.mrb[17].mxu1 }
 0xa85   :  { %v1254_v31 = vpop.f32.mrb[18].mxu1 }
 0xa86   :  { %1258 = vst.msk [vmem:[#allocation2 + $0x8] sm:$0xff] %vm422_vm3, %v1254_v31  ;;  %v2077_v35 = vpop.f32.mrb[19].mxu1 }
 0xa89   :  { %v1421_v36 = vpop.f32.mrb[20].mxu1 }
 0xa8a   :  { %1426 = vrot.lane.b32.xlu1 %v1421_v36, %s2405_s14  ;;  %v2087_v37 = vpop.f32.mrb[21].mxu1 }
 0xa8d   :  { %v1591_v38 = vpop.f32.mrb[22].mxu1 }
 0xa8e   :  { %1596 = vrot.lane.b32.xlu1 %v1591_v38, %s2416_s0  ;;  %v2097_v39 = vpop.f32.mrb[23].mxu1 }
 0xa91   :  { %v1761_v40 = vpop.f32.mrb[24].mxu1 }
 0xa92   :  { %1766 = vrot.lane.b32.xlu0 %v1761_v40, %s2417_s30  ;;  %v2107_v41 = vpop.f32.mrb[25].mxu1 }
 0xaf4   :  { %v1094_v42 = vpop.permute.xlu0 %1093 }
 0xaf5   :  { %1097 = vst.msk [vmem:[#allocation2] sm:$0xff] %vm1096_vm6, %v1094_v42 }
 0xafc   :  { %v1427_v43 = vpop.permute.xlu1 %1426  ;;  %v1770_v44 = vld [vmem:[#allocation2] sm:$0xff] }
 0xafd   :  { %1429 = vst.msk [vmem:[#allocation2 + $0x8] sm:$0xff] %vm754_vm4, %v1427_v43  ;;  %2116 = vmatprep.mubr.msk.f32.mxu0 %vm128_vm0, %v1770_v44 }
 0xb00   :  { %v1597_v0 = vpop.permute.xlu1 %1596 }
 0xb01   :  { %1599 = vst.msk [vmem:[#allocation2 + $0x8] sm:$0xff] %vm925_vm5, %v1597_v0 }
 0xb04   :  { %v1767_v45 = vpop.permute.xlu0 %1766 }
 0xb05   :  { %1769 = vst.msk [vmem:[#allocation2 + $0x8] sm:$0xff] %vm1096_vm6, %v1767_v45 }
 0xb0c   :  { %v1771_v46 = vld [vmem:[#allocation2 + $0x8] sm:$0xff] }
 0xb0d   :  { %2117 = vmatmul.mubr.msk.f32.vlgmr.msra.gmra.mrb[12].mxu0 %vm128_vm0, %v1771_v46 }
 0xbe0   :  { %v2118_v47 = vpop.f32.mrb[12].mxu0 }
 0xbe1   :  { %1870 = vst.msk [vmem:[#allocation15 + $0x8] sm:$0xff] %vm128_vm0, %v2118_v47  ;;  %v1860_v34 = vpop.f32.mrb[13].mxu0 }
 0xbe2   :  { %1869 = vst.msk [vmem:[#allocation15] sm:$0xff] %vm128_vm0, %v1860_v34 }
 0xbe3   :  { %2381 = shalt.err (!%p2378_p4)
}
 0xbe4   :  { %s2382_s21 = scalar_lea.hbm %s2816_s7, 256 }
 0xbe5   :  { %p2383_p5 = scmp.ne.s32.totalorder %s2816_s7, %s2382_s21  ;;  %p2386_p6 = scmp.lt.u32.totalorder %s2382_s21, %s2816_s7 }
 0xbe7   :  { %p2388_p7 = pnand %p2386_p6, %p2383_p5 }
 0xbe9   :  { %2391 = shalt.err (!%p2388_p7)
}
 0xbea   :  { %1882 = dma.vmem_to_hbm [thread:$0]  %s1877_s17, 256, %s2816_s7, [#allocation5], %s2404_s13, %s2404_s13, %s2405_s14  }
 0xbeb   :  { %2400 = dma.done.wait [#allocation5], 256  }
 0xbec   :  { %2401 = vsyncadd [#allocation5], 4294967040 }
 0xbed   :  { %1886 = vsyncpa [#allocation4], 1 }
 0xbee   :  { %1887 = vsyncpa [#allocation7], 1 }
 0xbef   :  { %1888 = vsyncpa [#allocation10], 1 }
 0xbf0   :  { %1889 = vsyncpa [#allocation13], 1 }
 0xbf1   :  { %1890 = vsyncpa [#allocation5], 1 }

</bundles_post_ra>
